<compile_context>
chip_gen: v5e
topology: v5e:2x2
jax: 0.10.0
libtpu: 0.0.40
codegen_flags: <defaults>
</compile_context>

<pallas_src>
import functools

import jax
import jax.numpy as jnp
from jax.experimental import pallas as pl
from jax.experimental.pallas import tpu as pltpu

LANE = 128  # TPU lane width


def _round_up(x, m):
    return (x + m - 1) // m * m


def mlp_kernel(x_ref, w1_ref, b1_ref, w2_ref, b2_ref, w3_ref, b3_ref, o_ref):
    """One batch tile: three chained MXU matmuls, f32 bias+ReLU epilogues."""
    x = x_ref[...]

    h1 = jnp.dot(x, w1_ref[...], preferred_element_type=jnp.float32) + b1_ref[...]
    h1 = jnp.maximum(h1, 0.0).astype(w2_ref.dtype)

    h2 = jnp.dot(h1, w2_ref[...], preferred_element_type=jnp.float32) + b2_ref[...]
    h2 = jnp.maximum(h2, 0.0).astype(w3_ref.dtype)

    o = jnp.dot(h2, w3_ref[...], preferred_element_type=jnp.float32) + b3_ref[...]
    o_ref[...] = o.astype(o_ref.dtype)


def net_forward(x, params, *, tile_b=512, use_bf16=False):
    """Fused forward pass of Net via a batch-tiled pallas_call.

    x: (batch, input_dim) float32
    params: dict with w1 (in,32), b1 (1,32), w2 (32,64), b2 (1,64),
            w3 (64,out), b3 (1,out) — weights stored as (in, out), i.e.
            PyTorch weight transposed, so the kernel computes x @ W + b.
    """
    w1, b1 = params["w1"], params["b1"]
    w2, b2 = params["w2"], params["b2"]
    w3, b3 = params["w3"], params["b3"]

    batch, in_dim = x.shape
    h1_dim = w1.shape[1]          # 32
    h2_dim = w2.shape[1]          # 64
    out_dim = w3.shape[1]

    # ---- lane-dense padding of feature dims (zeros => exact semantics) ----
    h1_p = _round_up(h1_dim, LANE)       # 32  -> 128
    h2_p = _round_up(h2_dim, LANE)       # 64  -> 128
    out_p = _round_up(out_dim, LANE)     # 4   -> 128

    f32 = jnp.float32
    w1_p = jnp.pad(w1.astype(f32), ((0, 0), (0, h1_p - h1_dim)))
    b1_p = jnp.pad(b1.astype(f32), ((0, 0), (0, h1_p - h1_dim)))
    w2_p = jnp.pad(w2.astype(f32), ((0, h1_p - h1_dim), (0, h2_p - h2_dim)))
    b2_p = jnp.pad(b2.astype(f32), ((0, 0), (0, h2_p - h2_dim)))
    w3_p = jnp.pad(w3.astype(f32), ((0, h2_p - h2_dim), (0, out_p - out_dim)))
    b3_p = jnp.pad(b3.astype(f32), ((0, 0), (0, out_p - out_dim)))

    # Optional bf16 matmul operands (v6e/v7x MXU native rate, halves x DMA
    # bytes). Biases stay f32 so the epilogue is f32 everywhere (v5e-safe).
    if use_bf16:
        cdt = jnp.bfloat16
        xc = x.astype(cdt)
        w1_p, w2_p, w3_p = w1_p.astype(cdt), w2_p.astype(cdt), w3_p.astype(cdt)
    else:
        cdt = f32
        xc = x.astype(f32)

    # ---- batch tiling: multiple of 16 covers both f32 and bf16 sublane
    # packing; cap at tile_b so large batches pipeline, small ones stay in
    # a single grid step. ----
    tile = min(tile_b, _round_up(batch, 16))
    tile = max(tile, 16)
    batch_p = _round_up(batch, tile)
    if batch_p != batch:
        xc = jnp.pad(xc, ((0, batch_p - batch), (0, 0)))
    n_tiles = batch_p // tile

    # ---- cost estimate (memory-bound: x in, out rows back) ----
    flops = 2 * batch * (in_dim * h1_dim + h1_dim * h2_dim + h2_dim * out_dim)
    bytes_accessed = (
        batch_p * in_dim * xc.dtype.itemsize
        + batch_p * out_p * 4
        + (w1_p.size + w2_p.size + w3_p.size) * w1_p.dtype.itemsize
        + (b1_p.size + b2_p.size + b3_p.size) * 4
    )

    const_spec = lambda shape: pl.BlockSpec(shape, lambda i: (0, 0))

    out_padded = pl.pallas_call(
        mlp_kernel,
        out_shape=jax.ShapeDtypeStruct((batch_p, out_p), jnp.float32),
        grid=(n_tiles,),
        in_specs=[
            pl.BlockSpec((tile, in_dim), lambda i: (i, 0)),   # x: per-tile
            const_spec((in_dim, h1_p)),                       # w1: resident
            const_spec((1, h1_p)),                            # b1
            const_spec((h1_p, h2_p)),                         # w2
            const_spec((1, h2_p)),                            # b2
            const_spec((h2_p, out_p)),                        # w3
            const_spec((1, out_p)),                           # b3
        ],
        out_specs=pl.BlockSpec((tile, out_p), lambda i: (i, 0)),
        compiler_params=pltpu.CompilerParams(
            dimension_semantics=("parallel",),
        ),
        cost_estimate=pl.CostEstimate(
            flops=flops, transcendentals=0, bytes_accessed=bytes_accessed
        ),
    )(xc, w1_p, b1_p, w2_p, b2_p, w3_p, b3_p)

    # Strip batch padding and lane padding -> exact (batch, output_dim).
    return out_padded[:batch, :out_dim]


def init_params(key, input_dim, output_dim):
    """Deterministic init mimicking PyTorch nn.Linear default:
    U(-1/sqrt(fan_in), 1/sqrt(fan_in)) for both weight and bias."""

    def linear(key, fan_in, fan_out):
        kw, kb = jax.random.split(key)
        bound = 1.0 / jnp.sqrt(fan_in)
        # stored as (in, out) == PyTorch weight transposed
        w = jax.random.uniform(kw, (fan_in, fan_out), jnp.float32, -bound, bound)
        b = jax.random.uniform(kb, (1, fan_out), jnp.float32, -bound, bound)
        return w, b

    k1, k2, k3 = jax.random.split(key, 3)
    w1, b1 = linear(k1, input_dim, 32)
    w2, b2 = linear(k2, 32, 64)
    w3, b3 = linear(k3, 64, output_dim)
    return {"w1": w1, "b1": b1, "w2": w2, "b2": b2, "w3": w3, "b3": b3}


def net_forward_ref(x, params):
    """Plain-JAX reference for correctness checking."""
    h1 = jnp.maximum(x @ params["w1"] + params["b1"], 0.0)
    h2 = jnp.maximum(h1 @ params["w2"] + params["b2"], 0.0)
    return h2 @ params["w3"] + params["b3"]


if __name__ == "__main__":
    input_dim = 16
    output_dim = 4
    batch = 8

    key = jax.random.PRNGKey(0)
    kx, kp = jax.random.split(key)

    x = jax.random.normal(kx, (batch, input_dim), dtype=jnp.float32)
    params = init_params(kp, input_dim, output_dim)

    ref = net_forward_ref(x, params)

    # f32 path: exact parity with the PyTorch-equivalent reference.
    fwd_f32 = jax.jit(functools.partial(net_forward, tile_b=512, use_bf16=False))
    out = jax.block_until_ready(fwd_f32(x, params))
    assert out.shape == (batch, output_dim)
    assert jnp.allclose(out, ref, atol=1e-5, rtol=1e-5)

    # bf16 matmul-operand path (the v6e/v7x-recommended variant): loose check.
    fwd_bf16 = jax.jit(functools.partial(net_forward, tile_b=512, use_bf16=True))
    out_bf16 = jax.block_until_ready(fwd_bf16(x, params))
    assert out_bf16.shape == (batch, output_dim)
    assert bool(jnp.all(jnp.isfinite(out_bf16)))
    assert jnp.allclose(out_bf16, ref, atol=5e-2, rtol=5e-2)

    print("KERNEL_OK")
</pallas_src>

<mosaic_0001>
module attributes {stable_mosaic.version = 11 : i64} {
  func.func @mlp_kernel(%arg0: i32, %arg1: memref<16x16xf32, #tpu.memory_space<vmem>>, %arg2: memref<16x128xf32, #tpu.memory_space<vmem>>, %arg3: memref<1x128xf32, #tpu.memory_space<vmem>>, %arg4: memref<128x128xf32, #tpu.memory_space<vmem>>, %arg5: memref<1x128xf32, #tpu.memory_space<vmem>>, %arg6: memref<128x128xf32, #tpu.memory_space<vmem>>, %arg7: memref<1x128xf32, #tpu.memory_space<vmem>>, %arg8: memref<16x128xf32, #tpu.memory_space<vmem>>) attributes {dimension_semantics = [#tpu.dimension_semantics<parallel>], iteration_bounds = array<i64: 1>, scalar_prefetch = 0 : i64, scratch_operands = 0 : i64, tpu.core_type = #tpu.core_type<tc>, window_params = [{transform_indices = @transform_0, window_bounds = array<i64: 16, 16>}, {pipeline_mode = #tpu.pipeline_mode<synchronous>, transform_indices = @transform_1, window_bounds = array<i64: 16, 128>}, {pipeline_mode = #tpu.pipeline_mode<synchronous>, transform_indices = @transform_2, window_bounds = array<i64: 1, 128>}, {pipeline_mode = #tpu.pipeline_mode<synchronous>, transform_indices = @transform_3, window_bounds = array<i64: 128, 128>}, {pipeline_mode = #tpu.pipeline_mode<synchronous>, transform_indices = @transform_4, window_bounds = array<i64: 1, 128>}, {pipeline_mode = #tpu.pipeline_mode<synchronous>, transform_indices = @transform_5, window_bounds = array<i64: 128, 128>}, {pipeline_mode = #tpu.pipeline_mode<synchronous>, transform_indices = @transform_6, window_bounds = array<i64: 1, 128>}, {transform_indices = @transform_7, window_bounds = array<i64: 16, 128>}]} {
    %c0 = arith.constant 0 : index
    %c0_0 = arith.constant 0 : index
    %0 = vector.load %arg1[%c0, %c0_0] : memref<16x16xf32, #tpu.memory_space<vmem>>, vector<16x16xf32>
    %c0_1 = arith.constant 0 : index
    %c0_2 = arith.constant 0 : index
    %1 = vector.load %arg2[%c0_1, %c0_2] : memref<16x128xf32, #tpu.memory_space<vmem>>, vector<16x128xf32>
    %cst = arith.constant dense<0.000000e+00> : vector<16x128xf32>
    %2 = tpu.matmul %0, %1, %cst {dimension_numbers = #tpu.dot_dimension_numbers<[1], [0], [0], [1], [0, 0, 1, 1], [], []>} : vector<16x16xf32>, vector<16x128xf32>, vector<16x128xf32> -> vector<16x128xf32>
    %c0_3 = arith.constant 0 : index
    %c0_4 = arith.constant 0 : index
    %3 = vector.load %arg3[%c0_3, %c0_4] : memref<1x128xf32, #tpu.memory_space<vmem>>, vector<1x128xf32>
    %4 = vector.broadcast %3 : vector<1x128xf32> to vector<16x128xf32>
    %5 = arith.addf %2, %4 : vector<16x128xf32>
    %cst_5 = arith.constant 0.000000e+00 : f32
    %6 = vector.broadcast %cst_5 : f32 to vector<16x128xf32>
    %7 = arith.maximumf %5, %6 : vector<16x128xf32>
    %c0_6 = arith.constant 0 : index
    %c0_7 = arith.constant 0 : index
    %8 = vector.load %arg4[%c0_6, %c0_7] : memref<128x128xf32, #tpu.memory_space<vmem>>, vector<128x128xf32>
    %cst_8 = arith.constant dense<0.000000e+00> : vector<16x128xf32>
    %9 = tpu.matmul %7, %8, %cst_8 {dimension_numbers = #tpu.dot_dimension_numbers<[1], [0], [0], [1], [0, 0, 1, 1], [], []>} : vector<16x128xf32>, vector<128x128xf32>, vector<16x128xf32> -> vector<16x128xf32>
    %c0_9 = arith.constant 0 : index
    %c0_10 = arith.constant 0 : index
    %10 = vector.load %arg5[%c0_9, %c0_10] : memref<1x128xf32, #tpu.memory_space<vmem>>, vector<1x128xf32>
    %11 = vector.broadcast %10 : vector<1x128xf32> to vector<16x128xf32>
    %12 = arith.addf %9, %11 : vector<16x128xf32>
    %cst_11 = arith.constant 0.000000e+00 : f32
    %13 = vector.broadcast %cst_11 : f32 to vector<16x128xf32>
    %14 = arith.maximumf %12, %13 : vector<16x128xf32>
    %c0_12 = arith.constant 0 : index
    %c0_13 = arith.constant 0 : index
    %15 = vector.load %arg6[%c0_12, %c0_13] : memref<128x128xf32, #tpu.memory_space<vmem>>, vector<128x128xf32>
    %cst_14 = arith.constant dense<0.000000e+00> : vector<16x128xf32>
    %16 = tpu.matmul %14, %15, %cst_14 {dimension_numbers = #tpu.dot_dimension_numbers<[1], [0], [0], [1], [0, 0, 1, 1], [], []>} : vector<16x128xf32>, vector<128x128xf32>, vector<16x128xf32> -> vector<16x128xf32>
    %c0_15 = arith.constant 0 : index
    %c0_16 = arith.constant 0 : index
    %17 = vector.load %arg7[%c0_15, %c0_16] : memref<1x128xf32, #tpu.memory_space<vmem>>, vector<1x128xf32>
    %18 = vector.broadcast %17 : vector<1x128xf32> to vector<16x128xf32>
    %19 = arith.addf %16, %18 : vector<16x128xf32>
    %c0_17 = arith.constant 0 : index
    %c0_18 = arith.constant 0 : index
    %20 = vector.load %arg8[%c0_17, %c0_18] : memref<16x128xf32, #tpu.memory_space<vmem>>, vector<16x128xf32>
    tpu.vector_store %arg8[%c0_17, %c0_18], %19 {strides = array<i32>} : memref<16x128xf32, #tpu.memory_space<vmem>>, vector<16x128xf32>,
    return
  }
  func.func @transform_0(%arg0: i32) -> (i32, i32) {
    %c0_i32 = arith.constant 0 : i32
    %c0_i32_0 = arith.constant 0 : i32
    return %arg0, %c0_i32 : i32, i32
  }
  func.func @transform_1(%arg0: i32) -> (i32, i32) {
    %c0_i32 = arith.constant 0 : i32
    %c0_i32_0 = arith.constant 0 : i32
    %c0_i32_1 = arith.constant 0 : i32
    return %c0_i32, %c0_i32_0 : i32, i32
  }
  func.func @transform_2(%arg0: i32) -> (i32, i32) {
    %c0_i32 = arith.constant 0 : i32
    %c0_i32_0 = arith.constant 0 : i32
    %c0_i32_1 = arith.constant 0 : i32
    return %c0_i32, %c0_i32_0 : i32, i32
  }
  func.func @transform_3(%arg0: i32) -> (i32, i32) {
    %c0_i32 = arith.constant 0 : i32
    %c0_i32_0 = arith.constant 0 : i32
    %c0_i32_1 = arith.constant 0 : i32
    return %c0_i32, %c0_i32_0 : i32, i32
  }
  func.func @transform_4(%arg0: i32) -> (i32, i32) {
    %c0_i32 = arith.constant 0 : i32
    %c0_i32_0 = arith.constant 0 : i32
    %c0_i32_1 = arith.constant 0 : i32
    return %c0_i32, %c0_i32_0 : i32, i32
  }
  func.func @transform_5(%arg0: i32) -> (i32, i32) {
    %c0_i32 = arith.constant 0 : i32
    %c0_i32_0 = arith.constant 0 : i32
    %c0_i32_1 = arith.constant 0 : i32
    return %c0_i32, %c0_i32_0 : i32, i32
  }
  func.func @transform_6(%arg0: i32) -> (i32, i32) {
    %c0_i32 = arith.constant 0 : i32
    %c0_i32_0 = arith.constant 0 : i32
    %c0_i32_1 = arith.constant 0 : i32
    return %c0_i32, %c0_i32_0 : i32, i32
  }
  func.func @transform_7(%arg0: i32) -> (i32, i32) {
    %c0_i32 = arith.constant 0 : i32
    %c0_i32_0 = arith.constant 0 : i32
    return %arg0, %c0_i32 : i32, i32
  }
}

</mosaic_0001>

<bundles_post_ra>
// kernel: net_forward.1
= control target key start
LH: loop header
LB: loop body
LE: loop exit
PB: predicated region body
PF: predicated region fallthrough
CT: control target
= control target key end

     0   :  { %vm34_vm0 = vcmask 130048   ;;  %s362_s1 = inlined_call_operand.vmem [shape: f32[16,128], index: 1, kind: input, shape index: {}]   ;;  %s363_s0 = inlined_call_operand.vmem [shape: f32[16,16], index: 0, kind: input, shape index: {}]   ;;  %s364_s3 = inlined_call_operand.vmem [shape: f32[128,128], index: 3, kind: input, shape index: {}]   ;;  %s365_s2 = inlined_call_operand.vmem [shape: f32[1,128], index: 2, kind: input, shape index: {}]   ;;  %s366_s4 = inlined_call_operand.vmem [shape: f32[1,128], index: 4, kind: input, shape index: {}]   ;;  %s367_s5 = inlined_call_operand.vmem [shape: f32[128,128], index: 5, kind: input, shape index: {}]   ;;  %s368_s6 = inlined_call_operand.vmem [shape: f32[1,128], index: 6, kind: input, shape index: {}]   ;;  %s369_s7 = inlined_call_operand.vmem [shape: f32[16,128], index: 7, kind: output, shape index: {}]  }
   0x1   :  { %v29_v0 = vld [vmem:[%s362_s1 + $0x8] sm:$0xff]  ;;  %v28_v1 = vld [vmem:[%s362_s1] sm:$0xff]  ;;  %v81_v3 = vld [vmem:[%s364_s3 + $0x78] sm:$0xff] }
   0x2   :  { %55 = vmatpush.msra.mxu0 %v29_v0  ;;  %v26_v2 = vld [vmem:[%s363_s0] sm:$0xff]  ;;  %v80_v4 = vld [vmem:[%s364_s3 + $0x70] sm:$0xff]  ;;  %86 = vmatpush.msra.mxu1 %v81_v3  ;;  %v79_v5 = vld [vmem:[%s364_s3 + $0x68] sm:$0xff] }
   0x3   :  { %162 = vmatpush.msra.mxu3 %v81_v3  ;;  %v78_v6 = vld [vmem:[%s364_s3 + $0x60] sm:$0xff]  ;;  %v77_v7 = vld [vmem:[%s364_s3 + $0x58] sm:$0xff]  ;;  %v27_v8 = vld [vmem:[%s363_s0 + $0x8] sm:$0xff] }
   0x4   :  { %56 = vmatpush.msra.mxu0 %v28_v1  ;;  %87 = vmatpush.msra.mxu1 %v80_v4  ;;  %v76_v9 = vld [vmem:[%s364_s3 + $0x50] sm:$0xff]  ;;  %v75_v10 = vld [vmem:[%s364_s3 + $0x48] sm:$0xff]  ;;  %v74_v11 = vld [vmem:[%s364_s3 + $0x40] sm:$0xff] }
   0x5   :  { %160 = vmatmul.msk.f32.vlgmr.msra.gmra.mxu0 %vm34_vm0, %v26_v2  ;;  %163 = vmatpush.msra.mxu3 %v80_v4  ;;  %v73_v12 = vld [vmem:[%s364_s3 + $0x38] sm:$0xff]  ;;  %v72_v13 = vld [vmem:[%s364_s3 + $0x30] sm:$0xff]  ;;  %v71_v14 = vld [vmem:[%s364_s3 + $0x28] sm:$0xff] }
   0x6   :  { %88 = vmatpush.msra.mxu1 %v79_v5  ;;  %v70_v15 = vld [vmem:[%s364_s3 + $0x20] sm:$0xff]  ;;  %v69_v16 = vld [vmem:[%s364_s3 + $0x18] sm:$0xff]  ;;  %v68_v17 = vld [vmem:[%s364_s3 + $0x10] sm:$0xff] }
   0x7   :  { %164 = vmatpush.msra.mxu3 %v79_v5  ;;  %v67_v18 = vld [vmem:[%s364_s3 + $0x8] sm:$0xff]  ;;  %v66_v19 = vld [vmem:[%s364_s3] sm:$0xff]  ;;  %v126_v20 = vld [vmem:[%s367_s5 + $0x78] sm:$0xff] }
   0x8   :  { %89 = vmatpush.msra.mxu1 %v78_v6  ;;  %v125_v21 = vld [vmem:[%s367_s5 + $0x70] sm:$0xff]  ;;  %131 = vmatpush.msrb.mxu0 %v126_v20  ;;  %v124_v22 = vld [vmem:[%s367_s5 + $0x68] sm:$0xff]  ;;  %v123_v23 = vld [vmem:[%s367_s5 + $0x60] sm:$0xff] }
   0x9   :  { %165 = vmatpush.msra.mxu3 %v78_v6  ;;  %178 = vmatpush.msra.mxu2 %v126_v20  ;;  %v122_v24 = vld [vmem:[%s367_s5 + $0x58] sm:$0xff]  ;;  %v121_v25 = vld [vmem:[%s367_s5 + $0x50] sm:$0xff]  ;;  %v120_v26 = vld [vmem:[%s367_s5 + $0x48] sm:$0xff] }
   0xa   :  { %90 = vmatpush.msra.mxu1 %v77_v7  ;;  %132 = vmatpush.msrb.mxu0 %v125_v21  ;;  %v119_v27 = vld [vmem:[%s367_s5 + $0x40] sm:$0xff]  ;;  %v118_v28 = vld [vmem:[%s367_s5 + $0x38] sm:$0xff]  ;;  %v117_v30 = vld [vmem:[%s367_s5 + $0x30] sm:$0xff] }
   0xb   :  { %166 = vmatpush.msra.mxu3 %v77_v7  ;;  %179 = vmatpush.msra.mxu2 %v125_v21  ;;  %v194_v29 = vld [vmem:[%s365_s2] ss:$0 sm:$0xff]  ;;  %v116_v31 = vld [vmem:[%s367_s5 + $0x28] sm:$0xff]  ;;  %v114_v36 = vld [vmem:[%s367_s5 + $0x18] sm:$0xff] }
   0xc   :  { %91 = vmatpush.msra.mxu1 %v76_v9  ;;  %133 = vmatpush.msrb.mxu0 %v124_v22  ;;  %v115_v34 = vld [vmem:[%s367_s5 + $0x20] sm:$0xff]  ;;  %v113_v40 = vld [vmem:[%s367_s5 + $0x10] sm:$0xff]  ;;  %v112_v41 = vld [vmem:[%s367_s5 + $0x8] sm:$0xff] }
   0xd   :  { %161 = vmatmul.msk.f32.gmra.mxu0 %vm34_vm0, %v27_v8  ;;  %167 = vmatpush.msra.mxu3 %v76_v9  ;;  %v111_v42 = vld [vmem:[%s367_s5] sm:$0xff] }
   0xe   :  { %92 = vmatpush.msra.mxu1 %v75_v10  ;;  %180 = vmatpush.msra.mxu2 %v124_v22  ;;  %v195_v43 = vld [vmem:[%s366_s4] ss:$0 sm:$0xff] }
   0xf   :  { %168 = vmatpush.msra.mxu3 %v75_v10  ;;  %134 = vmatpush.msrb.mxu0 %v123_v23  ;;  %v196_v50 = vld [vmem:[%s368_s6] ss:$0 sm:$0xff] }
  0x10   :  { %93 = vmatpush.msra.mxu1 %v74_v11  ;;  %181 = vmatpush.msra.mxu2 %v123_v23 }
  0x11   :  { %169 = vmatpush.msra.mxu3 %v74_v11  ;;  %135 = vmatpush.msrb.mxu0 %v122_v24 }
  0x12   :  { %94 = vmatpush.msra.mxu1 %v73_v12  ;;  %182 = vmatpush.msra.mxu2 %v122_v24 }
  0x13   :  { %170 = vmatpush.msra.mxu3 %v73_v12  ;;  %136 = vmatpush.msrb.mxu0 %v121_v25 }
  0x14   :  { %95 = vmatpush.msra.mxu1 %v72_v13  ;;  %183 = vmatpush.msra.mxu2 %v121_v25 }
  0x15   :  { %171 = vmatpush.msra.mxu3 %v72_v13  ;;  %137 = vmatpush.msrb.mxu0 %v120_v26 }
  0x16   :  { %96 = vmatpush.msra.mxu1 %v71_v14  ;;  %184 = vmatpush.msra.mxu2 %v120_v26 }
  0x17   :  { %172 = vmatpush.msra.mxu3 %v71_v14  ;;  %138 = vmatpush.msrb.mxu0 %v119_v27 }
  0x18   :  { %97 = vmatpush.msra.mxu1 %v70_v15  ;;  %185 = vmatpush.msra.mxu2 %v119_v27 }
  0x19   :  { %173 = vmatpush.msra.mxu3 %v70_v15  ;;  %139 = vmatpush.msrb.mxu0 %v118_v28 }
  0x1a   :  { %98 = vmatpush.msra.mxu1 %v69_v16  ;;  %186 = vmatpush.msra.mxu2 %v118_v28 }
  0x1b   :  { %174 = vmatpush.msra.mxu3 %v69_v16  ;;  %140 = vmatpush.msrb.mxu0 %v117_v30 }
  0x1c   :  { %99 = vmatpush.msra.mxu1 %v68_v17  ;;  %187 = vmatpush.msra.mxu2 %v117_v30 }
  0x1d   :  { %175 = vmatpush.msra.mxu3 %v68_v17  ;;  %141 = vmatpush.msrb.mxu0 %v116_v31 }
  0x1e   :  { %100 = vmatpush.msra.mxu1 %v67_v18  ;;  %188 = vmatpush.msra.mxu2 %v116_v31 }
  0x1f   :  { %176 = vmatpush.msra.mxu3 %v67_v18  ;;  %142 = vmatpush.msrb.mxu0 %v115_v34 }
  0x20   :  { %101 = vmatpush.msra.mxu1 %v66_v19  ;;  %189 = vmatpush.msra.mxu2 %v115_v34 }
  0x21   :  { %177 = vmatpush.msra.mxu3 %v66_v19  ;;  %143 = vmatpush.msrb.mxu0 %v114_v36 }
  0x22   :  { %190 = vmatpush.msra.mxu2 %v114_v36 }
  0x23   :  { %144 = vmatpush.msrb.mxu0 %v113_v40 }
  0x24   :  { %191 = vmatpush.msra.mxu2 %v113_v40 }
  0x25   :  { %145 = vmatpush.msrb.mxu0 %v112_v41 }
  0x26   :  { %192 = vmatpush.msra.mxu2 %v112_v41 }
  0x27   :  { %146 = vmatpush.msrb.mxu0 %v111_v42 }
  0x28   :  { %193 = vmatpush.msra.mxu2 %v111_v42 }
  0x82   :  { %v58_v32 = vpop.f32.mrf.mxu0 }
  0x83   :  { %v59_v33 = vadd.f32 %v194_v29, %v58_v32 }
  0x85   :  { %v64_v35 = vmax.f32 %v59_v33, 0.0 }
  0x87   :  { %102 = vmatmul.f32.vlgmr.msra.gmra.mxu1 %v64_v35 }
  0x8a   :  { %v61_v37 = vpop.f32.mrf.mxu0 }
  0x8b   :  { %v62_v38 = vadd.f32 %v194_v29, %v61_v37 }
  0x8d   :  { %v65_v39 = vmax.f32 %v62_v38, 0.0 }
  0x8f   :  { %105 = vmatmul.f32.vlgmr.msra.gmra.mxu3 %v65_v39 }
 0x104   :  { %v103_v44 = vpop.f32.mrf.mxu1 }
 0x105   :  { %v104_v45 = vadd.f32 %v195_v43, %v103_v44 }
 0x107   :  { %v109_v46 = vmax.f32 %v104_v45, 0.0 }
 0x109   :  { %147 = vmatmul.f32.vlgmr.msrb.gmra.mxu0 %v109_v46 }
 0x112   :  { %v106_v47 = vpop.f32.mrf.mxu3 }
 0x113   :  { %v107_v48 = vadd.f32 %v195_v43, %v106_v47 }
 0x115   :  { %v110_v49 = vmax.f32 %v107_v48, 0.0 }
 0x117   :  { %150 = vmatmul.f32.vlgmr.msra.gmra.mxu2 %v110_v49 }
 0x186   :  { %v148_v51 = vpop.f32.mrf.mxu0 }
 0x187   :  { %v149_v52 = vadd.f32 %v196_v50, %v148_v51 }
 0x189   :  { %154 = vst [vmem:[%s369_s7] sm:$0xff] %v149_v52 }
 0x19a   :  { %v151_v53 = vpop.f32.mrf.mxu2 }
 0x19b   :  { %v152_v54 = vadd.f32 %v196_v50, %v151_v53 }
 0x19d   :  { %155 = vst [vmem:[%s369_s7 + $0x8] sm:$0xff] %v152_v54 }

</bundles_post_ra>
